<compile_context>
chip_gen: v7x
topology: tpu7x:2x2x1
jax: 0.10.0
libtpu: 0.0.40
codegen_flags: <defaults>
</compile_context>

<pallas_src>
import jax
import jax.numpy as jnp
from jax import lax
from jax.experimental import pallas as pl
from jax.experimental.pallas import tpu as pltpu


_VMEM_LIMIT_BYTES = 32 * 1024 * 1024   # comfortable on v5e/v6e/v7x at these shapes
_EPS = 1e-5                            # BatchNorm2d default eps


def _pack_toeplitz_cat(w_hwio, W):
    """Pack (3,3,Cin,Cout) conv weights into one (3*W*Cin, W*Cout) banded matrix.

    T[kh*W*Cin + wx*Cin + ci, wo*Cout + co] = w[kh, wx-wo+1, ci, co] inside the
    3-tap band, 0 outside.  With the lane-packed, tap-concatenated lhs
        lhs[n*H+h, kh*W*Cin + wx*Cin + ci] = x[n, h+kh-1, wx, ci]  (zero padded)
    a single matmul lhs @ T reproduces Conv2d(kernel=3, stride=1, padding=1).
    """
    _, _, Cin, Cout = w_hwio.shape
    wx = jnp.arange(W)[:, None]                     # input column
    wo = jnp.arange(W)[None, :]                     # output column
    kw = wx - wo + 1                                # tap index (padding = 1)
    valid = (kw >= 0) & (kw < 3)
    kw_c = jnp.clip(kw, 0, 2)
    t = jnp.where(valid[None, :, :, None, None], w_hwio[:, kw_c], 0.0)  # (3,W,W,Cin,Cout)
    # rows = kh*W*Cin + wx*Cin + ci, cols = wo*Cout + co
    return t.transpose(0, 1, 3, 2, 4).reshape(3 * W * Cin, W * Cout)


@jax.jit
def conv_block(x_nchw, params):
    """Forward pass of the PyTorch `conv` module (NCHW in, NCHW out)."""
    N, Cin, H, W = x_nchw.shape
    Cout = params["w1"].shape[-1]
    Cmid = Cout                                     # both convs output out_channels
    count_inv = 1.0 / float(N * H * W)

    # NCHW -> lane-packed NHWC (N, H, W*C); pure layout plumbing in the wrapper.
    x = jnp.transpose(x_nchw, (0, 2, 3, 1)).reshape(N, H, W * Cin)

    # Parameter-only packing (hoisted by jit; does not serialize with the kernel).
    t1 = _pack_toeplitz_cat(params["w1"], W).astype(jnp.bfloat16)   # (3*W*Cin,  W*Cmid)
    t2 = _pack_toeplitz_cat(params["w2"], W).astype(jnp.bfloat16)   # (3*W*Cmid, W*Cout)

    def lane_tile(v):      # (C,) -> (1, W*C), lane index = w*C + c
        return jnp.tile(v, W).reshape(1, W * v.shape[0]).astype(jnp.float32)

    b1, g1, be1 = lane_tile(params["b1"]), lane_tile(params["g1"]), lane_tile(params["be1"])
    b2, g2, be2 = lane_tile(params["b2"]), lane_tile(params["g2"]), lane_tile(params["be2"])

    # 0/1 channel selector (W*C, C) and its transpose: lane->channel reduce and
    # channel->lane broadcast of the BN statistics, done on the MXU in-kernel.
    r = (jnp.arange(W * Cout)[:, None] % Cout
         == jnp.arange(Cout)[None, :]).astype(jnp.float32)          # (W*Cout, Cout)
    rt = r.T                                                        # (Cout, W*Cout)

    cn = (((1,), (0,)), ((), ()))                   # standard 2-D contraction

    def _fill_pad(xpad_ref, a_f32):
        """Zero-padded bf16 copy of a (N,H,WC) activation; image at rows [2,H+2)."""
        wc = xpad_ref.shape[-1]
        z2 = jnp.zeros((N, 2, wc), xpad_ref.dtype)
        xpad_ref[:, 0:2, :] = z2                                    # rows 0,1  = 0
        xpad_ref[:, 2:H + 2, :] = a_f32.astype(xpad_ref.dtype)      # rows 2..H+1
        xpad_ref[:, H + 2:H + 4, :] = z2                            # rows H+2,H+3 = 0

    def _conv_lhs(xpad_ref):
        """(N*H, 3*WC) bf16 tap-concatenated conv lhs (K-concat of the 3 H-taps)."""
        wc = xpad_ref.shape[-1]
        taps = [xpad_ref[:, 1 + kh:1 + kh + H, :] for kh in range(3)]
        return jnp.concatenate(taps, axis=2).reshape(N * H, 3 * wc)

    def _bn_relu(y, g_ref, be_ref, r_ref, rt_ref):
        """Training-mode BatchNorm (batch stats, biased var) + ReLU on (N*H, W*C)."""
        s_lane = jnp.sum(y, axis=0, keepdims=True)                          # (1, W*C)
        mean_c = lax.dot_general(s_lane, r_ref[...], cn,
                                 preferred_element_type=jnp.float32) * count_inv
        mean_lane = lax.dot_general(mean_c, rt_ref[...], cn,
                                    preferred_element_type=jnp.float32)     # (1, W*C)
        cen = y - mean_lane
        q_lane = jnp.sum(cen * cen, axis=0, keepdims=True)
        var_c = lax.dot_general(q_lane, r_ref[...], cn,
                                preferred_element_type=jnp.float32) * count_inv
        inv_lane = lax.dot_general(lax.rsqrt(var_c + _EPS), rt_ref[...], cn,
                                   preferred_element_type=jnp.float32)
        return jnp.maximum(cen * (g_ref[...] * inv_lane) + be_ref[...], 0.0)

    def kernel(x_ref, t1_ref, b1_ref, g1_ref, be1_ref,
               t2_ref, b2_ref, g2_ref, be2_ref, r_ref, rt_ref,
               o_ref, xpad1_ref, xpad2_ref):
        # ---- stage 1: conv1 + BN1 + ReLU1 (one fat matmul, M=N*H, K=3*W*Cin)
        _fill_pad(xpad1_ref, x_ref[...])
        y1 = lax.dot_general(_conv_lhs(xpad1_ref), t1_ref[...], cn,
                             preferred_element_type=jnp.float32) + b1_ref[...]
        a1 = _bn_relu(y1, g1_ref, be1_ref, r_ref, rt_ref)          # (N*H, W*Cmid) f32

        # ---- stage 2: activation never leaves VMEM; carried as bf16 in scratch
        _fill_pad(xpad2_ref, a1.reshape(N, H, W * Cmid))
        y2 = lax.dot_general(_conv_lhs(xpad2_ref), t2_ref[...], cn,
                             preferred_element_type=jnp.float32) + b2_ref[...]
        a2 = _bn_relu(y2, g2_ref, be2_ref, r_ref, rt_ref)          # (N*H, W*Cout) f32

        o_ref[...] = a2.reshape(N, H, W * Cout).astype(o_ref.dtype)

    out = pl.pallas_call(
        kernel,
        out_shape=jax.ShapeDtypeStruct((N, H, W * Cout), jnp.float32),
        scratch_shapes=[
            pltpu.VMEM((N, H + 4, W * Cin), jnp.bfloat16),
            pltpu.VMEM((N, H + 4, W * Cmid), jnp.bfloat16),
        ],
        compiler_params=pltpu.CompilerParams(vmem_limit_bytes=_VMEM_LIMIT_BYTES),
    )(x, t1, b1, g1, be1, t2, b2, g2, be2, r, rt)

    return jnp.transpose(out.reshape(N, H, W, Cout), (0, 3, 1, 2))


def init_params(key, in_channels, out_channels):
    """Deterministic parameter init (synthetic; mirrors the module's shapes)."""
    k1, k2, k3, k4 = jax.random.split(key, 4)
    fan1 = in_channels * 9
    fan2 = out_channels * 9
    return {
        "w1": jax.random.normal(k1, (3, 3, in_channels, out_channels),
                                jnp.float32) / jnp.sqrt(fan1),
        "b1": jax.random.normal(k2, (out_channels,), jnp.float32) * 0.1,
        "g1": jnp.ones((out_channels,), jnp.float32),     # BN affine defaults
        "be1": jnp.zeros((out_channels,), jnp.float32),
        "w2": jax.random.normal(k3, (3, 3, out_channels, out_channels),
                                jnp.float32) / jnp.sqrt(fan2),
        "b2": jax.random.normal(k4, (out_channels,), jnp.float32) * 0.1,
        "g2": jnp.ones((out_channels,), jnp.float32),
        "be2": jnp.zeros((out_channels,), jnp.float32),
    }


def _reference(x_nchw, params):
    """Pure-JAX reference mirroring the kernel's bf16 precision policy."""
    def stage(x, w, b, g, be):
        w_oihw = jnp.transpose(w, (3, 2, 0, 1))
        y = lax.conv_general_dilated(
            x.astype(jnp.bfloat16), w_oihw.astype(jnp.bfloat16),
            window_strides=(1, 1), padding=((1, 1), (1, 1)),
            dimension_numbers=("NCHW", "OIHW", "NCHW"),
            preferred_element_type=jnp.float32)
        y = y + b[None, :, None, None]
        mean = jnp.mean(y, axis=(0, 2, 3), keepdims=True)
        var = jnp.mean((y - mean) ** 2, axis=(0, 2, 3), keepdims=True)
        y = (y - mean) * lax.rsqrt(var + _EPS)
        y = y * g[None, :, None, None] + be[None, :, None, None]
        return jnp.maximum(y, 0.0)

    y = stage(x_nchw, params["w1"], params["b1"], params["g1"], params["be1"])
    y = y.astype(jnp.bfloat16).astype(jnp.float32)   # mirror bf16 carry
    y = stage(y, params["w2"], params["b2"], params["g2"], params["be2"])
    return y


if __name__ == "__main__":
    key = jax.random.PRNGKey(0)
    k_x, k_p = jax.random.split(key)

    N, Cin, Cout, H, W = 2, 4, 8, 16, 16
    x = jax.random.normal(k_x, (N, Cin, H, W), jnp.float32)
    params = init_params(k_p, Cin, Cout)

    out = jax.block_until_ready(conv_block(x, params))
    ref = jax.block_until_ready(_reference(x, params))

    assert out.shape == (N, Cout, H, W), out.shape
    err = float(jnp.max(jnp.abs(out - ref)))
    # Tolerance covers bf16 rounding of MXU operands / carried activations.
    assert err < 2e-2, err
    print("KERNEL_OK")
</pallas_src>

<mosaic_0001>
module attributes {stable_mosaic.version = 11 : i64} {
  func.func @kernel(%arg0: memref<2x16x64xf32, #tpu.memory_space<vmem>>, %arg1: memref<192x128xbf16, #tpu.memory_space<vmem>>, %arg2: memref<1x128xf32, #tpu.memory_space<vmem>>, %arg3: memref<1x128xf32, #tpu.memory_space<vmem>>, %arg4: memref<1x128xf32, #tpu.memory_space<vmem>>, %arg5: memref<384x128xbf16, #tpu.memory_space<vmem>>, %arg6: memref<1x128xf32, #tpu.memory_space<vmem>>, %arg7: memref<1x128xf32, #tpu.memory_space<vmem>>, %arg8: memref<1x128xf32, #tpu.memory_space<vmem>>, %arg9: memref<128x8xf32, #tpu.memory_space<vmem>>, %arg10: memref<8x128xf32, #tpu.memory_space<vmem>>, %arg11: memref<2x16x128xf32, #tpu.memory_space<vmem>>, %arg12: memref<2x20x64xbf16, #tpu.memory_space<vmem>>, %arg13: memref<2x20x128xbf16, #tpu.memory_space<vmem>>) attributes {dimension_semantics = [], scalar_prefetch = 0 : i64, scratch_operands = 2 : i64, tpu.core_type = #tpu.core_type<tc>} {
    %c0 = arith.constant 0 : index
    %c0_0 = arith.constant 0 : index
    %c0_1 = arith.constant 0 : index
    %0 = vector.load %arg0[%c0, %c0_0, %c0_1] : memref<2x16x64xf32, #tpu.memory_space<vmem>>, vector<2x16x64xf32>
    %cst = arith.constant 0.000000e+00 : bf16
    %1 = vector.broadcast %cst : bf16 to vector<2x2x64xbf16>
    %c0_2 = arith.constant 0 : index
    %c0_3 = arith.constant 0 : index
    %c0_4 = arith.constant 0 : index
    %2 = vector.load %arg12[%c0_2, %c0_3, %c0_4] : memref<2x20x64xbf16, #tpu.memory_space<vmem>>, vector<2x2x64xbf16>
    tpu.vector_store %arg12[%c0_2, %c0_3, %c0_4], %1 {strides = array<i32>} : memref<2x20x64xbf16, #tpu.memory_space<vmem>>, vector<2x2x64xbf16>,
    %3 = arith.truncf %0 : vector<2x16x64xf32> to vector<2x16x64xbf16>
    %c0_5 = arith.constant 0 : index
    %c2 = arith.constant 2 : index
    %c0_6 = arith.constant 0 : index
    %4 = vector.load %arg12[%c0_5, %c2, %c0_6] : memref<2x20x64xbf16, #tpu.memory_space<vmem>>, vector<2x16x64xbf16>
    tpu.vector_store %arg12[%c0_5, %c2, %c0_6], %3 {strides = array<i32>} : memref<2x20x64xbf16, #tpu.memory_space<vmem>>, vector<2x16x64xbf16>,
    %c0_7 = arith.constant 0 : index
    %c18 = arith.constant 18 : index
    %c0_8 = arith.constant 0 : index
    %5 = vector.load %arg12[%c0_7, %c18, %c0_8] : memref<2x20x64xbf16, #tpu.memory_space<vmem>>, vector<2x2x64xbf16>
    tpu.vector_store %arg12[%c0_7, %c18, %c0_8], %1 {strides = array<i32>} : memref<2x20x64xbf16, #tpu.memory_space<vmem>>, vector<2x2x64xbf16>,
    %c0_9 = arith.constant 0 : index
    %c1 = arith.constant 1 : index
    %c0_10 = arith.constant 0 : index
    %6 = vector.load %arg12[%c0_9, %c1, %c0_10] : memref<2x20x64xbf16, #tpu.memory_space<vmem>>, vector<2x16x64xbf16>
    %c0_11 = arith.constant 0 : index
    %c2_12 = arith.constant 2 : index
    %c0_13 = arith.constant 0 : index
    %7 = vector.load %arg12[%c0_11, %c2_12, %c0_13] : memref<2x20x64xbf16, #tpu.memory_space<vmem>>, vector<2x16x64xbf16>
    %c0_14 = arith.constant 0 : index
    %c3 = arith.constant 3 : index
    %c0_15 = arith.constant 0 : index
    %8 = vector.load %arg12[%c0_14, %c3, %c0_15] : memref<2x20x64xbf16, #tpu.memory_space<vmem>>, vector<2x16x64xbf16>
    %9 = tpu.concatenate %6, %7, %8 in 2 : vector<2x16x64xbf16>, vector<2x16x64xbf16>, vector<2x16x64xbf16> -> vector<2x16x192xbf16>
    %10 = vector.shape_cast %9 : vector<2x16x192xbf16> to vector<32x192xbf16>
    %c0_16 = arith.constant 0 : index
    %c0_17 = arith.constant 0 : index
    %11 = vector.load %arg1[%c0_16, %c0_17] : memref<192x128xbf16, #tpu.memory_space<vmem>>, vector<192x128xbf16>
    %cst_18 = arith.constant dense<0.000000e+00> : vector<32x128xf32>
    %12 = tpu.matmul %10, %11, %cst_18 {dimension_numbers = #tpu.dot_dimension_numbers<[1], [0], [0], [1], [0, 0, 1, 1], [], []>} : vector<32x192xbf16>, vector<192x128xbf16>, vector<32x128xf32> -> vector<32x128xf32>
    %c0_19 = arith.constant 0 : index
    %c0_20 = arith.constant 0 : index
    %13 = vector.load %arg2[%c0_19, %c0_20] : memref<1x128xf32, #tpu.memory_space<vmem>>, vector<1x128xf32>
    %14 = vector.broadcast %13 : vector<1x128xf32> to vector<32x128xf32>
    %15 = arith.addf %12, %14 : vector<32x128xf32>
    %cst_21 = arith.constant dense<0.000000e+00> : vector<128xf32>
    %16 = vector.multi_reduction <add>, %15, %cst_21 [0] : vector<32x128xf32> to vector<128xf32>
    %17 = vector.shape_cast %16 : vector<128xf32> to vector<1x128xf32>
    %c0_22 = arith.constant 0 : index
    %c0_23 = arith.constant 0 : index
    %18 = vector.load %arg9[%c0_22, %c0_23] : memref<128x8xf32, #tpu.memory_space<vmem>>, vector<128x8xf32>
    %cst_24 = arith.constant dense<0.000000e+00> : vector<1x8xf32>
    %19 = tpu.matmul %17, %18, %cst_24 {dimension_numbers = #tpu.dot_dimension_numbers<[1], [0], [0], [1], [0, 0, 1, 1], [], []>} : vector<1x128xf32>, vector<128x8xf32>, vector<1x8xf32> -> vector<1x8xf32>
    %cst_25 = arith.constant 0.001953125 : f32
    %20 = vector.broadcast %cst_25 : f32 to vector<1x8xf32>
    %21 = arith.mulf %19, %20 : vector<1x8xf32>
    %c0_26 = arith.constant 0 : index
    %c0_27 = arith.constant 0 : index
    %22 = vector.load %arg10[%c0_26, %c0_27] : memref<8x128xf32, #tpu.memory_space<vmem>>, vector<8x128xf32>
    %cst_28 = arith.constant dense<0.000000e+00> : vector<1x128xf32>
    %23 = tpu.matmul %21, %22, %cst_28 {dimension_numbers = #tpu.dot_dimension_numbers<[1], [0], [0], [1], [0, 0, 1, 1], [], []>} : vector<1x8xf32>, vector<8x128xf32>, vector<1x128xf32> -> vector<1x128xf32>
    %24 = vector.broadcast %23 : vector<1x128xf32> to vector<32x128xf32>
    %25 = arith.subf %15, %24 : vector<32x128xf32>
    %26 = arith.mulf %25, %25 : vector<32x128xf32>
    %cst_29 = arith.constant dense<0.000000e+00> : vector<128xf32>
    %27 = vector.multi_reduction <add>, %26, %cst_29 [0] : vector<32x128xf32> to vector<128xf32>
    %28 = vector.shape_cast %27 : vector<128xf32> to vector<1x128xf32>
    %c0_30 = arith.constant 0 : index
    %c0_31 = arith.constant 0 : index
    %29 = vector.load %arg9[%c0_30, %c0_31] : memref<128x8xf32, #tpu.memory_space<vmem>>, vector<128x8xf32>
    %cst_32 = arith.constant dense<0.000000e+00> : vector<1x8xf32>
    %30 = tpu.matmul %28, %29, %cst_32 {dimension_numbers = #tpu.dot_dimension_numbers<[1], [0], [0], [1], [0, 0, 1, 1], [], []>} : vector<1x128xf32>, vector<128x8xf32>, vector<1x8xf32> -> vector<1x8xf32>
    %cst_33 = arith.constant 0.001953125 : f32
    %31 = vector.broadcast %cst_33 : f32 to vector<1x8xf32>
    %32 = arith.mulf %30, %31 : vector<1x8xf32>
    %cst_34 = arith.constant 9.99999974E-6 : f32
    %33 = vector.broadcast %cst_34 : f32 to vector<1x8xf32>
    %34 = arith.addf %32, %33 : vector<1x8xf32>
    %35 = math.rsqrt %34 : vector<1x8xf32>
    %c0_35 = arith.constant 0 : index
    %c0_36 = arith.constant 0 : index
    %36 = vector.load %arg10[%c0_35, %c0_36] : memref<8x128xf32, #tpu.memory_space<vmem>>, vector<8x128xf32>
    %cst_37 = arith.constant dense<0.000000e+00> : vector<1x128xf32>
    %37 = tpu.matmul %35, %36, %cst_37 {dimension_numbers = #tpu.dot_dimension_numbers<[1], [0], [0], [1], [0, 0, 1, 1], [], []>} : vector<1x8xf32>, vector<8x128xf32>, vector<1x128xf32> -> vector<1x128xf32>
    %c0_38 = arith.constant 0 : index
    %c0_39 = arith.constant 0 : index
    %38 = vector.load %arg3[%c0_38, %c0_39] : memref<1x128xf32, #tpu.memory_space<vmem>>, vector<1x128xf32>
    %39 = arith.mulf %38, %37 : vector<1x128xf32>
    %40 = vector.broadcast %39 : vector<1x128xf32> to vector<32x128xf32>
    %41 = arith.mulf %25, %40 : vector<32x128xf32>
    %c0_40 = arith.constant 0 : index
    %c0_41 = arith.constant 0 : index
    %42 = vector.load %arg4[%c0_40, %c0_41] : memref<1x128xf32, #tpu.memory_space<vmem>>, vector<1x128xf32>
    %43 = vector.broadcast %42 : vector<1x128xf32> to vector<32x128xf32>
    %44 = arith.addf %41, %43 : vector<32x128xf32>
    %cst_42 = arith.constant 0.000000e+00 : f32
    %45 = vector.broadcast %cst_42 : f32 to vector<32x128xf32>
    %46 = arith.maximumf %44, %45 : vector<32x128xf32>
    %47 = vector.shape_cast %46 : vector<32x128xf32> to vector<2x16x128xf32>
    %cst_43 = arith.constant 0.000000e+00 : bf16
    %48 = vector.broadcast %cst_43 : bf16 to vector<2x2x128xbf16>
    %c0_44 = arith.constant 0 : index
    %c0_45 = arith.constant 0 : index
    %c0_46 = arith.constant 0 : index
    %49 = vector.load %arg13[%c0_44, %c0_45, %c0_46] : memref<2x20x128xbf16, #tpu.memory_space<vmem>>, vector<2x2x128xbf16>
    tpu.vector_store %arg13[%c0_44, %c0_45, %c0_46], %48 {strides = array<i32>} : memref<2x20x128xbf16, #tpu.memory_space<vmem>>, vector<2x2x128xbf16>,
    %50 = arith.truncf %47 : vector<2x16x128xf32> to vector<2x16x128xbf16>
    %c0_47 = arith.constant 0 : index
    %c2_48 = arith.constant 2 : index
    %c0_49 = arith.constant 0 : index
    %51 = vector.load %arg13[%c0_47, %c2_48, %c0_49] : memref<2x20x128xbf16, #tpu.memory_space<vmem>>, vector<2x16x128xbf16>
    tpu.vector_store %arg13[%c0_47, %c2_48, %c0_49], %50 {strides = array<i32>} : memref<2x20x128xbf16, #tpu.memory_space<vmem>>, vector<2x16x128xbf16>,
    %c0_50 = arith.constant 0 : index
    %c18_51 = arith.constant 18 : index
    %c0_52 = arith.constant 0 : index
    %52 = vector.load %arg13[%c0_50, %c18_51, %c0_52] : memref<2x20x128xbf16, #tpu.memory_space<vmem>>, vector<2x2x128xbf16>
    tpu.vector_store %arg13[%c0_50, %c18_51, %c0_52], %48 {strides = array<i32>} : memref<2x20x128xbf16, #tpu.memory_space<vmem>>, vector<2x2x128xbf16>,
    %c0_53 = arith.constant 0 : index
    %c1_54 = arith.constant 1 : index
    %c0_55 = arith.constant 0 : index
    %53 = vector.load %arg13[%c0_53, %c1_54, %c0_55] : memref<2x20x128xbf16, #tpu.memory_space<vmem>>, vector<2x16x128xbf16>
    %c0_56 = arith.constant 0 : index
    %c2_57 = arith.constant 2 : index
    %c0_58 = arith.constant 0 : index
    %54 = vector.load %arg13[%c0_56, %c2_57, %c0_58] : memref<2x20x128xbf16, #tpu.memory_space<vmem>>, vector<2x16x128xbf16>
    %c0_59 = arith.constant 0 : index
    %c3_60 = arith.constant 3 : index
    %c0_61 = arith.constant 0 : index
    %55 = vector.load %arg13[%c0_59, %c3_60, %c0_61] : memref<2x20x128xbf16, #tpu.memory_space<vmem>>, vector<2x16x128xbf16>
    %56 = tpu.concatenate %53, %54, %55 in 2 : vector<2x16x128xbf16>, vector<2x16x128xbf16>, vector<2x16x128xbf16> -> vector<2x16x384xbf16>
    %57 = vector.shape_cast %56 : vector<2x16x384xbf16> to vector<32x384xbf16>
    %c0_62 = arith.constant 0 : index
    %c0_63 = arith.constant 0 : index
    %58 = vector.load %arg5[%c0_62, %c0_63] : memref<384x128xbf16, #tpu.memory_space<vmem>>, vector<384x128xbf16>
    %cst_64 = arith.constant dense<0.000000e+00> : vector<32x128xf32>
    %59 = tpu.matmul %57, %58, %cst_64 {dimension_numbers = #tpu.dot_dimension_numbers<[1], [0], [0], [1], [0, 0, 1, 1], [], []>} : vector<32x384xbf16>, vector<384x128xbf16>, vector<32x128xf32> -> vector<32x128xf32>
    %c0_65 = arith.constant 0 : index
    %c0_66 = arith.constant 0 : index
    %60 = vector.load %arg6[%c0_65, %c0_66] : memref<1x128xf32, #tpu.memory_space<vmem>>, vector<1x128xf32>
    %61 = vector.broadcast %60 : vector<1x128xf32> to vector<32x128xf32>
    %62 = arith.addf %59, %61 : vector<32x128xf32>
    %cst_67 = arith.constant dense<0.000000e+00> : vector<128xf32>
    %63 = vector.multi_reduction <add>, %62, %cst_67 [0] : vector<32x128xf32> to vector<128xf32>
    %64 = vector.shape_cast %63 : vector<128xf32> to vector<1x128xf32>
    %c0_68 = arith.constant 0 : index
    %c0_69 = arith.constant 0 : index
    %65 = vector.load %arg9[%c0_68, %c0_69] : memref<128x8xf32, #tpu.memory_space<vmem>>, vector<128x8xf32>
    %cst_70 = arith.constant dense<0.000000e+00> : vector<1x8xf32>
    %66 = tpu.matmul %64, %65, %cst_70 {dimension_numbers = #tpu.dot_dimension_numbers<[1], [0], [0], [1], [0, 0, 1, 1], [], []>} : vector<1x128xf32>, vector<128x8xf32>, vector<1x8xf32> -> vector<1x8xf32>
    %cst_71 = arith.constant 0.001953125 : f32
    %67 = vector.broadcast %cst_71 : f32 to vector<1x8xf32>
    %68 = arith.mulf %66, %67 : vector<1x8xf32>
    %c0_72 = arith.constant 0 : index
    %c0_73 = arith.constant 0 : index
    %69 = vector.load %arg10[%c0_72, %c0_73] : memref<8x128xf32, #tpu.memory_space<vmem>>, vector<8x128xf32>
    %cst_74 = arith.constant dense<0.000000e+00> : vector<1x128xf32>
    %70 = tpu.matmul %68, %69, %cst_74 {dimension_numbers = #tpu.dot_dimension_numbers<[1], [0], [0], [1], [0, 0, 1, 1], [], []>} : vector<1x8xf32>, vector<8x128xf32>, vector<1x128xf32> -> vector<1x128xf32>
    %71 = vector.broadcast %70 : vector<1x128xf32> to vector<32x128xf32>
    %72 = arith.subf %62, %71 : vector<32x128xf32>
    %73 = arith.mulf %72, %72 : vector<32x128xf32>
    %cst_75 = arith.constant dense<0.000000e+00> : vector<128xf32>
    %74 = vector.multi_reduction <add>, %73, %cst_75 [0] : vector<32x128xf32> to vector<128xf32>
    %75 = vector.shape_cast %74 : vector<128xf32> to vector<1x128xf32>
    %c0_76 = arith.constant 0 : index
    %c0_77 = arith.constant 0 : index
    %76 = vector.load %arg9[%c0_76, %c0_77] : memref<128x8xf32, #tpu.memory_space<vmem>>, vector<128x8xf32>
    %cst_78 = arith.constant dense<0.000000e+00> : vector<1x8xf32>
    %77 = tpu.matmul %75, %76, %cst_78 {dimension_numbers = #tpu.dot_dimension_numbers<[1], [0], [0], [1], [0, 0, 1, 1], [], []>} : vector<1x128xf32>, vector<128x8xf32>, vector<1x8xf32> -> vector<1x8xf32>
    %cst_79 = arith.constant 0.001953125 : f32
    %78 = vector.broadcast %cst_79 : f32 to vector<1x8xf32>
    %79 = arith.mulf %77, %78 : vector<1x8xf32>
    %cst_80 = arith.constant 9.99999974E-6 : f32
    %80 = vector.broadcast %cst_80 : f32 to vector<1x8xf32>
    %81 = arith.addf %79, %80 : vector<1x8xf32>
    %82 = math.rsqrt %81 : vector<1x8xf32>
    %c0_81 = arith.constant 0 : index
    %c0_82 = arith.constant 0 : index
    %83 = vector.load %arg10[%c0_81, %c0_82] : memref<8x128xf32, #tpu.memory_space<vmem>>, vector<8x128xf32>
    %cst_83 = arith.constant dense<0.000000e+00> : vector<1x128xf32>
    %84 = tpu.matmul %82, %83, %cst_83 {dimension_numbers = #tpu.dot_dimension_numbers<[1], [0], [0], [1], [0, 0, 1, 1], [], []>} : vector<1x8xf32>, vector<8x128xf32>, vector<1x128xf32> -> vector<1x128xf32>
    %c0_84 = arith.constant 0 : index
    %c0_85 = arith.constant 0 : index
    %85 = vector.load %arg7[%c0_84, %c0_85] : memref<1x128xf32, #tpu.memory_space<vmem>>, vector<1x128xf32>
    %86 = arith.mulf %85, %84 : vector<1x128xf32>
    %87 = vector.broadcast %86 : vector<1x128xf32> to vector<32x128xf32>
    %88 = arith.mulf %72, %87 : vector<32x128xf32>
    %c0_86 = arith.constant 0 : index
    %c0_87 = arith.constant 0 : index
    %89 = vector.load %arg8[%c0_86, %c0_87] : memref<1x128xf32, #tpu.memory_space<vmem>>, vector<1x128xf32>
    %90 = vector.broadcast %89 : vector<1x128xf32> to vector<32x128xf32>
    %91 = arith.addf %88, %90 : vector<32x128xf32>
    %cst_88 = arith.constant 0.000000e+00 : f32
    %92 = vector.broadcast %cst_88 : f32 to vector<32x128xf32>
    %93 = arith.maximumf %91, %92 : vector<32x128xf32>
    %94 = vector.shape_cast %93 : vector<32x128xf32> to vector<2x16x128xf32>
    %c0_89 = arith.constant 0 : index
    %c0_90 = arith.constant 0 : index
    %c0_91 = arith.constant 0 : index
    %95 = vector.load %arg11[%c0_89, %c0_90, %c0_91] : memref<2x16x128xf32, #tpu.memory_space<vmem>>, vector<2x16x128xf32>
    tpu.vector_store %arg11[%c0_89, %c0_90, %c0_91], %94 {strides = array<i32>} : memref<2x16x128xf32, #tpu.memory_space<vmem>>, vector<2x16x128xf32>,
    return
  }
}

</mosaic_0001>

<bundles_post_ra>
// kernel: tile.33
= control target key start
LH: loop header
LB: loop body
LE: loop exit
PB: predicated region body
PF: predicated region fallthrough
CT: control target
= control target key end

     0   :  { %s28_s0 = inlined_call_operand.vmem [shape: f32[8], index: 0, kind: input, shape index: {}]   ;;  %s29_s1 = inlined_call_operand.vmem [shape: f32[16,8], index: 1, kind: output, shape index: {}]  }
   0x1   :  { %v4_v0 = vld [vmem:[%s28_s0] ss:$0 sm:$0xff] }
   0x2   :  { %5 = vst [vmem:[%s29_s1] sm:$0xff] %v4_v0  ;;  %8 = vst [vmem:[%s29_s1 + $0x8] sm:$0xff] %v4_v0 }

// kernel: tile.34
= control target key start
LH: loop header
LB: loop body
LE: loop exit
PB: predicated region body
PF: predicated region fallthrough
CT: control target
= control target key end

     0   :  { %s131_s10 = smov 120   ;;  %s132_s11 = smov 104   ;;  %vm3_vm0 = vcmask 64512   ;;  %vm9_vm1 = vcmask 1048512   ;;  %vm15_vm2 = vcmask 982912   ;;  %vm21_vm3 = vcmask 917312   ;;  %s207_s0 = inlined_call_operand.vmem [shape: f32[16,8], index: 0, kind: input, shape index: {}]   ;;  %s208_s1 = inlined_call_operand.vmem [shape: f32[1,128], index: 1, kind: output, shape index: {}]  }
   0x1   :  { %v101_v0 = vld [vmem:[%s207_s0 + $0xf] sm:$0x1]   ;;  %v103_v1 = vld [vmem:[%s207_s0 + $0xd] sm:$0x1]   ;;  %v102_v2 = vld [vmem:[%s207_s0 + $0xe] sm:$0x1]  }
   0x2   :  { %7 = vrot.lane.b32.xlu0 %v101_v0, %s131_s10  ;;  %19 = vrot.lane.b32.xlu1 %v103_v1, %s132_s11  ;;  %v104_v3 = vld [vmem:[%s207_s0 + $0xc] sm:$0x1]   ;;  %s133_s16 = smov 112   ;;  %s134_s17 = smov 96   ;;  %v105_v4 = vld [vmem:[%s207_s0 + $0xb] sm:$0x1]  }
   0x3   :  { %v106_v5 = vld [vmem:[%s207_s0 + $0xa] sm:$0x1]   ;;  %v2_v6 = vld [vmem:[%s207_s0] sm:$0x1]   ;;  %s135_s24 = smov 88   ;;  %s136_s25 = smov 80  }
   0x4   :  { %4 = vst.msk [vmem:[#allocation0] sm:$0x1] %vm3_vm0, %v2_v6   ;;  %v107_v7 = vld [vmem:[%s207_s0 + $0x9] sm:$0x1]   ;;  %v108_v8 = vld [vmem:[%s207_s0 + $0x8] sm:$0x1]  }
   0x5   :  { %s137_s30 = smov 72   ;;  %s138_s2 = smov 64   ;;  %v109_v9 = vld [vmem:[%s207_s0 + $0x7] sm:$0x1]   ;;  %v110_v10 = vld [vmem:[%s207_s0 + $0x6] sm:$0x1]  }
   0x6   :  { %13 = vrot.lane.b32.xlu0 %v102_v2, %s133_s16  ;;  %25 = vrot.lane.b32.xlu1 %v104_v3, %s134_s17  ;;  %s139_s7 = smov 56   ;;  %s140_s8 = smov 48   ;;  %v111_v11 = vld [vmem:[%s207_s0 + $0x5] sm:$0x1]   ;;  %v112_v12 = vld [vmem:[%s207_s0 + $0x4] sm:$0x1]  }
   0x7   :  { %s141_s13 = smov 40   ;;  %s142_s14 = smov 32   ;;  %v113_v13 = vld [vmem:[%s207_s0 + $0x3] sm:$0x1]   ;;  %v114_v14 = vld [vmem:[%s207_s0 + $0x2] sm:$0x1]  }
   0x8   :  { %s143_s19 = smov 24   ;;  %s144_s20 = smov 16   ;;  %v115_v15 = vld [vmem:[%s207_s0 + $0x1] sm:$0x1]   ;;  %vm27_vm4 = vcmask 851712   ;;  %vm33_vm5 = vcmask 786112  }
   0x9   :  { %s145_s0 = smov 8   ;;  %vm39_vm6 = vcmask 720512   ;;  %vm45_vm7 = vcmask 654912   ;;  %vm51_vm8 = vcmask 589312   ;;  %vm57_vm9 = vcmask 523712  }
   0xa   :  { %31 = vrot.lane.b32.xlu0 %v105_v4, %s135_s24  ;;  %37 = vrot.lane.b32.xlu1 %v106_v5, %s136_s25  ;;  %vm63_vm10 = vcmask 458112   ;;  %vm69_vm11 = vcmask 392512   ;;  %vm75_vm12 = vcmask 326912   ;;  %vm81_vm13 = vcmask 261312  }
   0xb   :  { %vm87_vm14 = vcmask 195712   ;;  %vm93_vm15 = vcmask 130112  }
   0xe   :  { %43 = vrot.lane.b32.xlu0 %v107_v7, %s137_s30  ;;  %49 = vrot.lane.b32.xlu1 %v108_v8, %s138_s2 }
  0x12   :  { %55 = vrot.lane.b32.xlu0 %v109_v9, %s139_s7  ;;  %61 = vrot.lane.b32.xlu1 %v110_v10, %s140_s8 }
  0x16   :  { %67 = vrot.lane.b32.xlu0 %v111_v11, %s141_s13  ;;  %73 = vrot.lane.b32.xlu1 %v112_v12, %s142_s14 }
  0x1a   :  { %79 = vrot.lane.b32.xlu0 %v113_v13, %s143_s19  ;;  %85 = vrot.lane.b32.xlu1 %v114_v14, %s144_s20 }
  0x1e   :  { %91 = vrot.lane.b32.xlu0 %v115_v15, %s145_s0 }
  0x74   :  { %v8_v16 = vpop.permute.xlu0 %7   ;;  %v20_v17 = vpop.permute.xlu1 %19  }
  0x75   :  { %10 = vst.msk [vmem:[#allocation0] sm:$0x1] %vm9_vm1, %v8_v16  }
  0x78   :  { %v14_v18 = vpop.permute.xlu0 %13   ;;  %v26_v19 = vpop.permute.xlu1 %25  }
  0x79   :  { %16 = vst.msk [vmem:[#allocation0] sm:$0x1] %vm15_vm2, %v14_v18  }
  0x7a   :  { %22 = vst.msk [vmem:[#allocation0] sm:$0x1] %vm21_vm3, %v20_v17  }
  0x7b   :  { %28 = vst.msk [vmem:[#allocation0] sm:$0x1] %vm27_vm4, %v26_v19  }
  0x7c   :  { %v32_v20 = vpop.permute.xlu0 %31   ;;  %v38_v21 = vpop.permute.xlu1 %37  }
  0x7d   :  { %34 = vst.msk [vmem:[#allocation0] sm:$0x1] %vm33_vm5, %v32_v20  }
  0x7e   :  { %40 = vst.msk [vmem:[#allocation0] sm:$0x1] %vm39_vm6, %v38_v21  }
  0x80   :  { %v44_v22 = vpop.permute.xlu0 %43   ;;  %v50_v23 = vpop.permute.xlu1 %49  }
  0x81   :  { %46 = vst.msk [vmem:[#allocation0] sm:$0x1] %vm45_vm7, %v44_v22  }
  0x82   :  { %52 = vst.msk [vmem:[#allocation0] sm:$0x1] %vm51_vm8, %v50_v23  }
  0x84   :  { %v56_v24 = vpop.permute.xlu0 %55   ;;  %v62_v25 = vpop.permute.xlu1 %61  }
  0x85   :  { %58 = vst.msk [vmem:[#allocation0] sm:$0x1] %vm57_vm9, %v56_v24  }
  0x86   :  { %64 = vst.msk [vmem:[#allocation0] sm:$0x1] %vm63_vm10, %v62_v25  }
  0x88   :  { %v68_v26 = vpop.permute.xlu0 %67   ;;  %v74_v27 = vpop.permute.xlu1 %73  }
  0x89   :  { %70 = vst.msk [vmem:[#allocation0] sm:$0x1] %vm69_vm11, %v68_v26  }
  0x8a   :  { %76 = vst.msk [vmem:[#allocation0] sm:$0x1] %vm75_vm12, %v74_v27  }
  0x8c   :  { %v80_v28 = vpop.permute.xlu0 %79   ;;  %v86_v29 = vpop.permute.xlu1 %85  }
  0x8d   :  { %82 = vst.msk [vmem:[#allocation0] sm:$0x1] %vm81_vm13, %v80_v28  }
  0x8e   :  { %88 = vst.msk [vmem:[#allocation0] sm:$0x1] %vm87_vm14, %v86_v29  }
  0x90   :  { %v92_v30 = vpop.permute.xlu0 %91  }
  0x91   :  { %94 = vst.msk [vmem:[#allocation0] sm:$0x1] %vm93_vm15, %v92_v30  }
  0x98   :  { %v98_v31 = vld [vmem:[#allocation0] sm:$0x1] }
  0x99   :  { %100 = vst [vmem:[%s208_s1] sm:$0x1] %v98_v31 }

// kernel: conv_block.1
= control target key start
LH: loop header
LB: loop body
LE: loop exit
PB: predicated region body
PF: predicated region fallthrough
CT: control target
= control target key end

     0   :  { %vm43_vm0 = vcmask 516096   ;;  %vm58_vm1 = vcmask 1040384   ;;  %vm59_vm2 = vcmask 1044484   ;;  %v2126_v6 = vmov 0   ;;  %s2127_s19 = smov 64   ;;  %s2613_s0 = inlined_call_operand.vmem [shape: f32[2,16,64], index: 0, kind: input, shape index: {}]   ;;  %s2614_s1 = inlined_call_operand.vmem [shape: bf16[192,128], index: 1, kind: input, shape index: {}]   ;;  %s2615_s9 = inlined_call_operand.vmem [shape: f32[128,8], index: 9, kind: input, shape index: {}]   ;;  %s2616_s10 = inlined_call_operand.vmem [shape: f32[8,128], index: 10, kind: input, shape index: {}]   ;;  %s2617_s2 = inlined_call_operand.vmem [shape: f32[1,128], index: 2, kind: input, shape index: {}]   ;;  %s2618_s5 = inlined_call_operand.vmem [shape: bf16[384,128], index: 5, kind: input, shape index: {}]   ;;  %s2619_s3 = inlined_call_operand.vmem [shape: f32[1,128], index: 3, kind: input, shape index: {}]   ;;  %s2620_s4 = inlined_call_operand.vmem [shape: f32[1,128], index: 4, kind: input, shape index: {}]   ;;  %s2621_s6 = inlined_call_operand.vmem [shape: f32[1,128], index: 6, kind: input, shape index: {}]   ;;  %s2622_s7 = inlined_call_operand.vmem [shape: f32[1,128], index: 7, kind: input, shape index: {}]   ;;  %s2623_s8 = inlined_call_operand.vmem [shape: f32[1,128], index: 8, kind: input, shape index: {}]   ;;  %s2624_s11 = inlined_call_operand.vmem [shape: f32[2,16,128], index: 11, kind: output, shape index: {}]  }
   0x1   :  { %v39_v0 = vld [vmem:[%s2613_s0] sm:$0xff]  ;;  %v40_v1 = vld [vmem:[%s2613_s0 + $0x8] sm:$0xff]  ;;  %v41_v4 = vld [vmem:[%s2613_s0 + $0x10] sm:$0xff]  ;;  %336 = vmatprep.subr.bf16.mxu0 %v2126_v6  ;;  %44 = vst.msk [vmem:[#allocation2] sm:$0x1] %vm43_vm0, %v2126_v6  ;;  %vm77_vm3 = vcmask 519169  }
   0x2   :  { %v1669_v2 = vpack.c.bf16 %v39_v0, %v39_v0  ;;  %v1670_v3 = vpack.c.bf16 %v40_v1, %v40_v1  ;;  %v42_v5 = vld [vmem:[%s2613_s0 + $0x18] sm:$0xff]  ;;  %45 = vst.msk [vmem:[#allocation2 + $0xc] sm:$0x1] %vm43_vm0, %v2126_v6  ;;  %750 = vst [vmem:[#allocation3] sm:$0x1] %v2126_v6  ;;  %v1671_v7 = vpack.c.bf16 %v41_v4, %v41_v4  ;;  %v2076_v9 = vld [vmem:[%s2614_s1] sm:$0xff]  }
   0x3   :  { %751 = vst [vmem:[#allocation3 + $0xc] sm:$0x1] %v2126_v6  ;;  %v1672_v8 = vpack.c.bf16 %v42_v5, %v42_v5  ;;  %vm79_vm4 = vcmask 519168   ;;  %v2077_v12 = vld [vmem:[%s2614_s1 + $0x8] sm:$0xff]   ;;  %vm2218_vm5 = vmor %vm58_vm1, %vm59_vm2  ;;  %337 = vmatpush1.bf16.msra.mxu0 %v2076_v9  ;;  %v2078_v22 = vld [vmem:[%s2614_s1 + $0x10] sm:$0xff]   ;;  %vm163_vm6 = vcmask 1046528  }
   0x4   :  { %v61_v10 = vrot.slane %v1669_v2, 7  ;;  %v63_v11 = vrot.slane %v1670_v3, 7  ;;  %v66_v14 = vrot.slane %v1671_v7, 7  ;;  %338 = vmatprep.subr.bf16.mxu0 %v2126_v6  ;;  %v2079_v24 = vld [vmem:[%s2614_s1 + $0x18] sm:$0xff]   ;;  %v2080_v28 = vld [vmem:[%s2614_s1 + $0x20] sm:$0xff]   ;;  %v2081_v39 = vld [vmem:[%s2614_s1 + $0x28] sm:$0xff]  }
   0x5   :  { %v68_v15 = vrot.slane %v1672_v8, 7  ;;  %vm120_vm7 = vsmask.f32 7424  ;;  %v2082_v52 = vld [vmem:[%s2614_s1 + $0x30] sm:$0xff]   ;;  %v2083_v60 = vld [vmem:[%s2614_s1 + $0x38] sm:$0xff]   ;;  %vm170_vm8 = vcmask 523264  }
   0x6   :  { %v62_v16 = vrot.slane %v61_v10, 4  ;;  %v65_v17 = vrot.slane %v63_v11, 4  ;;  %78 = vst.msk [vmem:[#allocation2] sm:$0xe] %vm77_vm3, %v61_v10  ;;  %v67_v18 = vrot.slane %v66_v14, 4  ;;  %v2128_v63 = vmov 0.0|0.0  }
   0x7   :  { %v70_v19 = vrot.slane %v68_v15, 4  ;;  %82 = vst.msk [vmem:[#allocation2 + $0xc] sm:$0xe] %vm77_vm3, %v66_v14  ;;  %339 = vmatpush1.bf16.msra.mxu0 %v2077_v12  ;;  %1971 = vmatprep.subr.bf16.mxu1 %v2128_v63  ;;  %v394_v0 = vld [vmem:[%s2615_s9] sm:$0xff]  ;;  %v395_v1 = vld [vmem:[%s2615_s9 + $0x8] sm:$0xff]  ;;  %v2086_v5 = vld [vmem:[%s2614_s1 + $0x50] sm:$0xff]  }
   0x8   :  { %v64_v20 = vsel %vm2218_vm5, %v62_v16, %v63_v11  ;;  %81 = vst.msk [vmem:[#allocation2 + $0x8] sm:$0x1] %vm43_vm0, %v65_v17  ;;  %v69_v21 = vsel %vm2218_vm5, %v67_v18, %v68_v15  ;;  %340 = vmatprep.subr.bf16.mxu0 %v2126_v6  ;;  %v2084_v2 = vld [vmem:[%s2614_s1 + $0x40] sm:$0xff]   ;;  %v2290_v3 = vpack.c.bf16 %v395_v1, %v394_v0  ;;  %v2085_v4 = vld [vmem:[%s2614_s1 + $0x48] sm:$0xff]   ;;  %v2087_v7 = vld [vmem:[%s2614_s1 + $0x58] sm:$0xff]   ;;  %vm2129_vm9 = vmmov 0  }
   0x9   :  { %80 = vst.msk [vmem:[#allocation2 + $0x4] sm:$0xf] %vm79_vm4, %v64_v20  ;;  %83 = vst.msk [vmem:[#allocation2 + $0x10] sm:$0xf] %vm79_vm4, %v69_v21  ;;  %v408_v0 = vld [vmem:[%s2615_s9 + $0x70] sm:$0xff]  ;;  %v409_v1 = vld [vmem:[%s2615_s9 + $0x78] sm:$0xff] }
   0xa   :  { %84 = vst.msk [vmem:[#allocation2 + $0x14] sm:$0x1] %vm43_vm0, %v70_v19  ;;  %1973 = vmatpush3.bf16.msra.mxu1 %v2290_v3  ;;  %vm482_vm10 = vcmask 64512  }
   0xb   :  { %341 = vmatpush1.bf16.msra.mxu0 %v2078_v22  ;;  %1974 = vmatprep.subr.bf16.mxu1 %v2128_v63 }
   0xc   :  { %342 = vmatprep.subr.bf16.mxu0 %v2126_v6 }
   0xd   :  { %v94_v23 = vld [vmem:[#allocation2] sm:$0xe] }
   0xe   :  { %v95_v25 = vld [vmem:[#allocation2 + $0xc] sm:$0xe]  ;;  %v88_v11 = vld [vmem:[#allocation2] sm:$0xf] }
   0xf   :  { %v2241_v26 = vld [vmem:[#allocation2 + $0x8] ss:$0 sps:$4 sm:$0x11]   ;;  %343 = vmatpush1.bf16.msra.mxu0 %v2079_v24  ;;  %v91_v14 = vld [vmem:[#allocation2 + $0xc] sm:$0xf] }
  0x10   :  { %v2243_v27 = vld [vmem:[#allocation2 + $0x4] sm:$0xf]  ;;  %v129_v30 = vshll.u32 %v2241_v26, 16  ;;  %v2250_v31 = vld [vmem:[#allocation2 + $0x10] sm:$0xf]  ;;  %344 = vmatprep.subr.bf16.mxu0 %v2126_v6  ;;  %v133_v56 = vshrl.u32 %v2241_v26, 16 }
  0x11   :  { %v1607_v29 = vcombine.low %v94_v23, %v2243_v27  ;;  %v2252_v32 = vld [vmem:[#allocation2 + $0x14] ss:$0 sps:$4 sm:$0x11]   ;;  %v2255_v33 = vcombine.low %v95_v25, %v2250_v31  ;;  %v2088_v40 = vld [vmem:[#allocation2 + $0x8] ss:$0 sps:$4 sm:$0x33]   ;;  %v1603_v15 = vcombine.low %v88_v11, %v2243_v27  ;;  %v1605_v17 = vcombine.low %v91_v14, %v2250_v31 }
  0x12   :  { %v143_v36 = vshll.u32 %v2252_v32, 16  ;;  %v131_v42 = vrot.slane %v129_v30, 1  ;;  %v165_v46 = vrot.slane %v2088_v40, 1  ;;  %v147_v57 = vshrl.u32 %v2252_v32, 16  ;;  %v1611_v11 = vld [vmem:[%s2617_s2] ss:$0 sm:$0xff] }
  0x13   :  { %v122_v34 = vshrl.u32 %v1607_v29, 16  ;;  %v124_v35 = vshll.u32 %v1607_v29, 16  ;;  %v136_v37 = vshrl.u32 %v2255_v33, 16  ;;  %v138_v38 = vshll.u32 %v2255_v33, 16  ;;  %345 = vmatpush1.bf16.msra.mxu0 %v2080_v28 }
  0x14   :  { %v164_v43 = vrot.slane %v1607_v29, 1  ;;  %v145_v45 = vrot.slane %v143_v36, 1  ;;  %346 = vmatprep.subr.bf16.mxu0 %v2126_v6  ;;  %v199_v50 = vshll.u32 %v165_v46, 16  ;;  %v2089_v8 = vld [vmem:[#allocation2 + $0x14] ss:$0 sps:$4 sm:$0x33]  }
  0x15   :  { %v126_v41 = vrot.slane %v124_v35, 1  ;;  %v140_v44 = vrot.slane %v138_v38, 1  ;;  %v167_v9 = vrot.slane %v2255_v33, 1  ;;  %v168_v10 = vrot.slane %v2089_v8, 1 }
  0x16   :  { %v166_v49 = vsel %vm163_vm6, %v164_v43, %v165_v46  ;;  %v201_v59 = vrot.slane %v199_v50, 1  ;;  %v397_v46 = vld [vmem:[%s2615_s9 + $0x18] sm:$0xff] }
  0x17   :  { %v127_v47 = vor.u32 %v126_v41, %v122_v34  ;;  %v141_v48 = vor.u32 %v140_v44, %v136_v37  ;;  %347 = vmatpush1.bf16.msra.mxu0 %v2081_v39  ;;  %v192_v53 = vshrl.u32 %v166_v49, 16  ;;  %v194_v54 = vshll.u32 %v166_v49, 16  ;;  %v399_v49 = vld [vmem:[%s2615_s9 + $0x28] sm:$0xff] }
  0x18   :  { %348 = vmatprep.subr.bf16.mxu0 %v2126_v6  ;;  %v169_v12 = vsel %vm163_vm6, %v167_v9, %v168_v10  ;;  %v221_v22 = vshll.u32 %v168_v10, 16 }
  0x19   :  { %v132_v51 = vsel %vm120_vm7, %v127_v47, %v131_v42  ;;  %v146_v55 = vsel %vm120_vm7, %v141_v48, %v145_v45  ;;  %v196_v58 = vrot.slane %v194_v54, 1  ;;  %v216_v16 = vshll.u32 %v169_v12, 16  ;;  %v398_v48 = vld [vmem:[%s2615_s9 + $0x20] sm:$0xff] }
  0x1a   :  { %149 = vrot.lane.b32.xlu0 %v132_v51, %s2127_s19  ;;  %153 = vrot.lane.b32.xlu1 %v146_v55, %s2127_s19  ;;  %v214_v21 = vshrl.u32 %v169_v12, 16  ;;  %v223_v33 = vrot.slane %v221_v22, 1  ;;  %v2337_v50 = vpack.c.bf16 %v399_v49, %v398_v48  ;;  %v400_v51 = vld [vmem:[%s2615_s9 + $0x30] sm:$0xff]  ;;  %v402_v54 = vld [vmem:[%s2615_s9 + $0x40] sm:$0xff] }
  0x1b   :  { %349 = vmatpush1.bf16.msra.mxu0 %v2082_v52  ;;  %v197_v61 = vor.u32 %v196_v58, %v192_v53  ;;  %v401_v52 = vld [vmem:[%s2615_s9 + $0x38] sm:$0xff]  ;;  %v403_v55 = vld [vmem:[%s2615_s9 + $0x48] sm:$0xff] }
  0x1c   :  { %350 = vmatprep.subr.bf16.mxu0 %v2126_v6  ;;  %v2347_v53 = vpack.c.bf16 %v401_v52, %v400_v51  ;;  %v405_v58 = vld [vmem:[%s2615_s9 + $0x58] sm:$0xff] }
  0x1d   :  { %v202_v62 = vsel %vm120_vm7, %v197_v61, %v201_v59  ;;  %v407_v61 = vld [vmem:[%s2615_s9 + $0x68] sm:$0xff] }
  0x1e   :  { %151 = vrot.lane.b32.xlu0 %v133_v56, %s2127_s19  ;;  %155 = vrot.lane.b32.xlu1 %v147_v57, %s2127_s19  ;;  %v2357_v56 = vpack.c.bf16 %v403_v55, %v402_v54  ;;  %v404_v57 = vld [vmem:[%s2615_s9 + $0x50] sm:$0xff] }
  0x1f   :  { %1624 = vmatprep.mubr.msk.bf16.mxu0 %vm170_vm8, %v202_v62  ;;  %351 = vmatpush1.bf16.msra.mxu0 %v2083_v60  ;;  %v2367_v59 = vpack.c.bf16 %v405_v58, %v404_v57  ;;  %v406_v60 = vld [vmem:[%s2615_s9 + $0x60] sm:$0xff] }
  0x20   :  { %352 = vmatprep.subr.bf16.mxu0 %v2126_v6  ;;  %v2377_v62 = vpack.c.bf16 %v407_v61, %v406_v60 }
  0x23   :  { %353 = vmatpush1.bf16.msra.mxu0 %v2084_v2  ;;  %v2386_v2 = vpack.c.bf16 %v409_v1, %v408_v0 }
  0x24   :  { %354 = vmatprep.subr.bf16.mxu0 %v2126_v6 }
  0x27   :  { %355 = vmatpush1.bf16.msra.mxu0 %v2085_v4  ;;  %v2130_v4 = vmov 0.0  }
  0x28   :  { %356 = vmatprep.subr.bf16.mxu0 %v2126_v6  ;;  %1823 = vmatprep.mubr.msk.f32.mxu1 %vm2129_vm9, %v2130_v4 }
  0x2b   :  { %357 = vmatpush1.bf16.msra.mxu0 %v2086_v5  ;;  %v2399_v5 = vld [vmem:[%s2616_s10] sm:$0xff] }
  0x2c   :  { %358 = vmatprep.subr.bf16.mxu0 %v2126_v6  ;;  %v218_v6 = vrot.slane %v216_v16, 1 }
  0x2e   :  { %v219_v27 = vor.u32 %v218_v6, %v214_v21 }
  0x2f   :  { %359 = vmatpush1.bf16.msra.mxu0 %v2087_v7 }
  0x30   :  { %v224_v39 = vsel %vm120_vm7, %v219_v27, %v223_v33  ;;  %1826 = vmatprep.subr.mxu0 %v2130_v4 }
  0x8c   :  { %v150_v18 = vpop.permute.xlu0 %149  ;;  %v154_v20 = vpop.permute.xlu1 %153 }
  0x8d   :  { %v173_v19 = vsel %vm170_vm8, %v1603_v15, %v150_v18  ;;  %v178_v24 = vsel %vm170_vm8, %v1605_v17, %v154_v20 }
  0x8e   :  { %v183_v23 = vshll.u32 %v173_v19, 16  ;;  %v181_v34 = vshrl.u32 %v173_v19, 16  ;;  %v205_v31 = vshll.u32 %v178_v24, 16  ;;  %v203_v40 = vshrl.u32 %v178_v24, 16 }
  0x90   :  { %v185_v25 = vrot.slane %v183_v23, 1  ;;  %v152_v28 = vpop.permute.xlu0 %151  ;;  %v156_v30 = vpop.permute.xlu1 %155  ;;  %v207_v41 = vrot.slane %v205_v31, 1  ;;  %v556_v31 = vlaneseq }
  0x91   :  { %v175_v29 = vsel %vm170_vm8, %v2241_v26, %v152_v28  ;;  %v180_v36 = vsel %vm170_vm8, %v2252_v32, %v156_v30  ;;  %v396_v32 = vld [vmem:[%s2615_s9 + $0x10] sm:$0xff] }
  0x92   :  { %v187_v35 = vshll.u32 %v175_v29, 16  ;;  %v186_v37 = vor.u32 %v185_v25, %v181_v34  ;;  %v209_v42 = vshll.u32 %v180_v36, 16  ;;  %v208_v26 = vor.u32 %v207_v41, %v203_v40 }
  0x93   :  { %v2327_v47 = vpack.c.bf16 %v397_v46, %v396_v32 }
  0x94   :  { %v189_v38 = vrot.slane %v187_v35, 1  ;;  %v211_v44 = vrot.slane %v209_v42, 1  ;;  %v557_v35 = vshrl.u32 %v556_v31, 7  ;;  %v723_v31 = vld [vmem:[%s2619_s3] sm:$0x1] }
  0x95   :  { %1976 = vmatpush3.bf16.msra.mxu1 %v2327_v47 }
  0x96   :  { %v190_v43 = vsel %vm120_vm7, %v186_v37, %v189_v38  ;;  %v212_v45 = vsel %vm120_vm7, %v208_v26, %v211_v44  ;;  %1977 = vmatprep.subr.bf16.mxu1 %v2128_v63  ;;  %v2427_v36 = vsub.s32 0, %v557_v35 }
  0x97   :  { %369 = vmatmul.mubr.bf16.vlgmr.msra.gmra.mrb[0].mxu0 %v190_v43 }
  0x98   :  { %1625 = vmatprep.mubr.msk.bf16.mxu0 %vm170_vm8, %v224_v39  ;;  %1827 = vmatpush3.msra.mxu0 %v2399_v5 }
  0x99   :  { %1979 = vmatpush3.bf16.msra.mxu1 %v2337_v50  ;;  %1866 = vmatprep.subr.mxu0 %v2130_v4 }
  0x9a   :  { %1980 = vmatprep.subr.bf16.mxu1 %v2128_v63 }
  0x9d   :  { %1982 = vmatpush3.bf16.msra.mxu1 %v2347_v53 }
  0x9e   :  { %1983 = vmatprep.subr.bf16.mxu1 %v2128_v63 }
  0x9f   :  { %377 = vmatmul.mubr.bf16.gmra.mrb[4].mxu0 %v212_v45 }
  0xa0   :  { %1828 = vmatprep.mubr.msk.f32.mxu0 %vm2129_vm9, %v2130_v4 }
  0xa1   :  { %1985 = vmatpush3.bf16.msra.mxu1 %v2357_v56 }
  0xa2   :  { %1986 = vmatprep.subr.bf16.mxu1 %v2128_v63 }
  0xa5   :  { %1988 = vmatpush3.bf16.msra.mxu1 %v2367_v59 }
  0xa6   :  { %1989 = vmatprep.subr.bf16.mxu1 %v2128_v63 }
  0xa9   :  { %1991 = vmatpush3.bf16.msra.mxu1 %v2377_v62 }
  0xaa   :  { %1992 = vmatprep.subr.bf16.mxu1 %v2128_v63 }
  0xad   :  { %1994 = vmatpush3.bf16.msra.mxu1 %v2386_v2 }
  0xae   :  { %1995 = vmatprep.subr.bf16.mxu1 %v2128_v63 }
 0x16a   :  { %v370_v7 = vpop.f32.mrb[0].mxu0 }
 0x16b   :  { %v372_v8 = vpop.f32.mrb[1].mxu0  ;;  %v371_v14 = vadd.f32 %v1611_v11, %v370_v7 }
 0x16c   :  { %v373_v9 = vpop.f32.mrb[2].mxu0  ;;  %v2090_v8 = vld [vmem:[%s2618_s5 + $0x80] sm:$0xff]  }
 0x16d   :  { %v375_v10 = vpop.f32.mrb[3].mxu0  ;;  %v374_v12 = vadd.f32 %v1611_v11, %v373_v9  ;;  %v2091_v9 = vld [vmem:[%s2618_s5 + $0x40] sm:$0xff]  }
 0x16e   :  { %v2092_v10 = vld [vmem:[%s2618_s5 + $0x88] sm:$0xff]  }
 0x16f   :  { %v385_v16 = vadd.f32 %v374_v12, %v371_v14 }
 0x172   :  { %v378_v15 = vpop.f32.mrb[4].mxu0 }
 0x173   :  { %v379_v17 = vadd.f32 %v1611_v11, %v378_v15  ;;  %v380_v18 = vpop.f32.mrb[5].mxu0  ;;  %v2096_v15 = vld [vmem:[%s2618_s5 + $0x8] sm:$0xff]  }
 0x174   :  { %v381_v19 = vpop.f32.mrb[6].mxu0  ;;  %v2099_v18 = vld [vmem:[%s2618_s5 + $0x10] sm:$0xff]  }
 0x175   :  { %v386_v20 = vadd.f32 %v385_v16, %v379_v17  ;;  %v382_v21 = vadd.f32 %v1611_v11, %v381_v19  ;;  %v383_v6 = vpop.f32.mrb[7].mxu0  ;;  %v2093_v11 = vld [vmem:[%s2618_s5] sm:$0xff]   ;;  %v2097_v16 = vld [vmem:[%s2618_s5 + $0x50] sm:$0xff]   ;;  %v2100_v19 = vld [vmem:[%s2618_s5 + $0x58] sm:$0xff]  }
 0x176   :  { %v2103_v6 = vld [vmem:[%s2618_s5 + $0x60] sm:$0xff]  }
 0x177   :  { %v387_v22 = vadd.f32 %v386_v20, %v382_v21  ;;  %v2101_v20 = vld [vmem:[%s2618_s5 + $0xa0] sm:$0xff]  }
 0x179   :  { %v388_v23 = vrot.slane %v387_v22, 4 }
 0x17b   :  { %v389_v24 = vadd.f32 %v388_v23, %v387_v22  ;;  %v2104_v22 = vld [vmem:[%s2618_s5 + $0xa8] sm:$0xff]   ;;  %v2105_v23 = vld [vmem:[%s2618_s5 + $0x20] sm:$0xff]  }
 0x17d   :  { %v390_v25 = vrot.slane %v389_v24, 2 }
 0x17f   :  { %v391_v28 = vadd.f32 %v390_v25, %v389_v24  ;;  %v2106_v24 = vld [vmem:[%s2618_s5 + $0x68] sm:$0xff]   ;;  %v2107_v25 = vld [vmem:[%s2618_s5 + $0xb0] sm:$0xff]  }
 0x181   :  { %v392_v29 = vrot.slane %v391_v28, 1 }
 0x183   :  { %v393_v30 = vadd.f32 %v392_v29, %v391_v28  ;;  %v2108_v28 = vld [vmem:[%s2618_s5 + $0x28] sm:$0xff]   ;;  %v2109_v29 = vld [vmem:[%s2618_s5 + $0x70] sm:$0xff]  }
 0x185   :  { %1824 = vmatmul.mubr.f32.vlgmr.msra.gmra.mrb[0].mxu1 %v393_v30  ;;  %v2110_v30 = vld [vmem:[%s2618_s5 + $0xb8] sm:$0xff]  }
 0x186   :  { %1997 = vmatpush3.bf16.msra.mxu1 %v2290_v3  ;;  %1863 = vmatprep.mubr.msk.f32.mxu1 %vm2129_vm9, %v2130_v4 }
 0x187   :  { %1998 = vmatprep.subr.bf16.mxu1 %v2128_v63 }
 0x18a   :  { %2000 = vmatpush3.bf16.msra.mxu1 %v2327_v47 }
 0x18b   :  { %2001 = vmatprep.subr.bf16.mxu1 %v2128_v63 }
 0x18e   :  { %2003 = vmatpush3.bf16.msra.mxu1 %v2337_v50 }
 0x18f   :  { %2004 = vmatprep.subr.bf16.mxu1 %v2128_v63 }
 0x192   :  { %2006 = vmatpush3.bf16.msra.mxu1 %v2347_v53 }
 0x193   :  { %2007 = vmatprep.subr.bf16.mxu1 %v2128_v63 }
 0x196   :  { %2009 = vmatpush3.bf16.msra.mxu1 %v2357_v56 }
 0x197   :  { %2010 = vmatprep.subr.bf16.mxu1 %v2128_v63 }
 0x19a   :  { %2012 = vmatpush3.bf16.msra.mxu1 %v2367_v59 }
 0x19b   :  { %2013 = vmatprep.subr.bf16.mxu1 %v2128_v63 }
 0x19e   :  { %2015 = vmatpush3.bf16.msra.mxu1 %v2377_v62 }
 0x19f   :  { %2016 = vmatprep.subr.bf16.mxu1 %v2128_v63 }
 0x1a2   :  { %2018 = vmatpush3.bf16.msra.mxu1 %v2386_v2 }
 0x1a3   :  { %1871 = vmatprep.subr.bf16.mxu1 %v2090_v8 }
 0x258   :  { %v476_v27 = vpop.f32.mrb[0].mxu1 }
 0x259   :  { %v480_v33 = vmul.f32 0.001953125, %v476_v27  ;;  %v1825_v34 = vpop.f32.mrb[1].mxu1  ;;  %v2111_v27 = vld [vmem:[%s2618_s5 + $0x30] sm:$0xff]  }
 0x25a   :  { %v2117_v34 = vld [vmem:[%s2618_s5 + $0x38] sm:$0xff]  }
 0x25b   :  { %1829 = vmatmul.mubr.msk.f32.vlgmr.msra.gmra.mrb[8].mxu0 %vm482_vm10, %v480_v33  ;;  %v2114_v33 = vld [vmem:[%s2618_s5 + $0x78] sm:$0xff]  }
 0x25c   :  { %1867 = vmatpush3.msra.mxu0 %v2399_v5  ;;  %1868 = vmatprep.mubr.msk.f32.mxu0 %vm2129_vm9, %v2130_v4 }
 0x25d   :  { %1715 = vmatprep.subr.bf16.mxu0 %v2091_v9 }
 0x32e   :  { %v552_v37 = vpop.f32.mrb[8].mxu0 }
 0x32f   :  { %v559_v38 = vrot.slane %v552_v37, %v2427_v36  ;;  %v1830_v39 = vpop.f32.mrb[9].mxu0 }
 0x331   :  { %v2430_v40 = vsub.f32 %v371_v14, %v559_v38  ;;  %v2432_v41 = vsub.f32 %v374_v12, %v559_v38  ;;  %v2434_v42 = vsub.f32 %v379_v17, %v559_v38  ;;  %v2436_v43 = vsub.f32 %v382_v21, %v559_v38  ;;  %v2094_v12 = vld [vmem:[%s2618_s5 + $0x48] sm:$0xff]   ;;  %v2095_v14 = vld [vmem:[%s2618_s5 + $0x90] sm:$0xff]   ;;  %v2098_v17 = vld [vmem:[%s2618_s5 + $0x98] sm:$0xff]  }
 0x332   :  { %v2102_v21 = vld [vmem:[%s2618_s5 + $0x18] sm:$0xff]  }
 0x333   :  { %v564_v26 = vmul.f32 %v2430_v40, %v2430_v40  ;;  %v565_v44 = vmul.f32 %v2432_v41, %v2432_v41  ;;  %v566_v45 = vmul.f32 %v2434_v42, %v2434_v42  ;;  %v567_v46 = vmul.f32 %v2436_v43, %v2436_v43 }
 0x335   :  { %v568_v32 = vadd.f32 %v565_v44, %v564_v26  ;;  %v1628_v26 = vld [vmem:[%s2620_s4] ss:$0 sm:$0xff] }
 0x337   :  { %v569_v48 = vadd.f32 %v568_v32, %v566_v45 }
 0x339   :  { %v570_v49 = vadd.f32 %v569_v48, %v567_v46 }
 0x33b   :  { %v571_v51 = vrot.slane %v570_v49, 4 }
 0x33d   :  { %v572_v52 = vadd.f32 %v571_v51, %v570_v49 }
 0x33f   :  { %v573_v54 = vrot.slane %v572_v52, 2 }
 0x341   :  { %v574_v55 = vadd.f32 %v573_v54, %v572_v52 }
 0x343   :  { %v575_v57 = vrot.slane %v574_v55, 1 }
 0x345   :  { %v576_v58 = vadd.f32 %v575_v57, %v574_v55 }
 0x347   :  { %1864 = vmatmul.mubr.f32.vlgmr.msra.gmra.mrb[2].mxu1 %v576_v58 }
 0x348   :  { %1872 = vmatpush3.bf16.msra.mxu1 %v2090_v8 }
 0x349   :  { %1873 = vmatprep.subr.bf16.mxu1 %v2092_v10 }
 0x34c   :  { %1874 = vmatpush3.bf16.msra.mxu1 %v2092_v10 }
 0x34d   :  { %1875 = vmatprep.subr.bf16.mxu1 %v2095_v14 }
 0x350   :  { %1876 = vmatpush3.bf16.msra.mxu1 %v2095_v14 }
 0x351   :  { %1877 = vmatprep.subr.bf16.mxu1 %v2098_v17 }
 0x354   :  { %1878 = vmatpush3.bf16.msra.mxu1 %v2098_v17 }
 0x355   :  { %1879 = vmatprep.subr.bf16.mxu1 %v2101_v20 }
 0x358   :  { %1880 = vmatpush3.bf16.msra.mxu1 %v2101_v20 }
 0x359   :  { %1881 = vmatprep.subr.bf16.mxu1 %v2104_v22 }
 0x35c   :  { %1882 = vmatpush3.bf16.msra.mxu1 %v2104_v22 }
 0x35d   :  { %1883 = vmatprep.subr.bf16.mxu1 %v2107_v25 }
 0x360   :  { %1884 = vmatpush3.bf16.msra.mxu1 %v2107_v25 }
 0x361   :  { %1885 = vmatprep.subr.bf16.mxu1 %v2110_v30 }
 0x364   :  { %1886 = vmatpush3.bf16.msra.mxu1 %v2110_v30 }
 0x365   :  { %1926 = vmatprep.subr.mxu1 %v2130_v4 }
 0x41a   :  { %v643_v60 = vpop.f32.mrb[2].mxu1 }
 0x41b   :  { %v647_v61 = vmul.f32 0.001953125, %v643_v60  ;;  %v1865_v0 = vpop.f32.mrb[3].mxu1 }
 0x41d   :  { %v648_v1 = vadd.f32 1e-05, %v647_v61 }
 0x41f   :  { %2122 = vrsqrt.f32 %v648_v1 }
 0x429   :  { %v2123_v7 = vpop.eup %2122 }
 0x42a   :  { %1869 = vmatmul.mubr.msk.f32.vlgmr.msra.gmra.mrb[10].mxu0 %vm482_vm10, %v2123_v7 }
 0x42b   :  { %1716 = vmatpush3.bf16.msra.mxu0 %v2093_v11 }
 0x42c   :  { %1717 = vmatprep.subr.bf16.mxu0 %v2094_v12 }
 0x42f   :  { %1718 = vmatpush3.bf16.msra.mxu0 %v2096_v15 }
 0x430   :  { %1719 = vmatprep.subr.bf16.mxu0 %v2097_v16 }
 0x433   :  { %1720 = vmatpush3.bf16.msra.mxu0 %v2099_v18 }
 0x434   :  { %1721 = vmatprep.subr.bf16.mxu0 %v2100_v19 }
 0x437   :  { %1722 = vmatpush3.bf16.msra.mxu0 %v2102_v21 }
 0x438   :  { %1723 = vmatprep.subr.bf16.mxu0 %v2103_v6 }
 0x43b   :  { %1724 = vmatpush3.bf16.msra.mxu0 %v2105_v23 }
 0x43c   :  { %1725 = vmatprep.subr.bf16.mxu0 %v2106_v24 }
 0x43f   :  { %1726 = vmatpush3.bf16.msra.mxu0 %v2108_v28 }
 0x440   :  { %1727 = vmatprep.subr.bf16.mxu0 %v2109_v29 }
 0x443   :  { %1728 = vmatpush3.bf16.msra.mxu0 %v2111_v27 }
 0x444   :  { %1729 = vmatprep.subr.bf16.mxu0 %v2114_v33 }
 0x447   :  { %1730 = vmatpush3.bf16.msra.mxu0 %v2117_v34 }
 0x448   :  { %2019 = vmatprep.subr.bf16.mxu0 %v2128_v63 }
 0x4fd   :  { %v719_v35 = vpop.f32.mrb[10].mxu0 }
 0x4fe   :  { %v724_v37 = vmul.f32 %v723_v31, %v719_v35  ;;  %v1870_v38 = vpop.f32.mrb[11].mxu0 }
 0x500   :  { %v729_v39 = vrot.slane %v724_v37, %v2427_v36 }
 0x502   :  { %v731_v44 = vmul.f32 %v729_v39, %v2430_v40  ;;  %v732_v45 = vmul.f32 %v729_v39, %v2432_v41  ;;  %v733_v32 = vmul.f32 %v729_v39, %v2434_v42  ;;  %v734_v46 = vmul.f32 %v729_v39, %v2436_v43 }
 0x504   :  { %v742_v48 = vadd.f32 %v1628_v26, %v731_v44  ;;  %v743_v49 = vadd.f32 %v1628_v26, %v732_v45  ;;  %v744_v51 = vadd.f32 %v1628_v26, %v733_v32  ;;  %v745_v52 = vadd.f32 %v1628_v26, %v734_v46 }
 0x506   :  { %v746_v54 = vmax.f32 %v742_v48, 0.0  ;;  %v747_v55 = vmax.f32 %v743_v49, 0.0  ;;  %v748_v57 = vmax.f32 %v744_v51, 0.0  ;;  %v749_v58 = vmax.f32 %v745_v52, 0.0 }
 0x508   :  { %v1673_v60 = vpack.c.bf16 %v746_v54, %v746_v54  ;;  %v1674_v61 = vpack.c.bf16 %v747_v55, %v747_v55  ;;  %v1675_v0 = vpack.c.bf16 %v748_v57, %v748_v57  ;;  %v1676_v1 = vpack.c.bf16 %v749_v58, %v749_v58 }
 0x50a   :  { %v764_v7 = vrot.slane %v1673_v60, 7  ;;  %v766_v40 = vrot.slane %v1674_v61, 7  ;;  %v769_v8 = vrot.slane %v1675_v0, 7  ;;  %v771_v41 = vrot.slane %v1676_v1, 7 }
 0x50c   :  { %v765_v9 = vrot.slane %v764_v7, 4  ;;  %v768_v42 = vrot.slane %v766_v40, 4  ;;  %v770_v10 = vrot.slane %v769_v8, 4  ;;  %v773_v43 = vrot.slane %v771_v41, 4  ;;  %780 = vst [vmem:[#allocation3] sm:$0xe] %v764_v7 }
 0x50d   :  { %783 = vst [vmem:[#allocation3 + $0xc] sm:$0xe] %v769_v8 }
 0x50e   :  { %v767_v11 = vsel %vm2218_vm5, %v765_v9, %v766_v40  ;;  %v772_v12 = vsel %vm2218_vm5, %v770_v10, %v771_v41  ;;  %782 = vst [vmem:[#allocation3 + $0x8] sm:$0x1] %v768_v42  ;;  %785 = vst [vmem:[#allocation3 + $0x14] sm:$0x1] %v773_v43 }
 0x50f   :  { %781 = vst [vmem:[#allocation3 + $0x4] sm:$0xf] %v767_v11  ;;  %784 = vst [vmem:[#allocation3 + $0x10] sm:$0xf] %v772_v12 }
 0x513   :  { %v794_v14 = vld [vmem:[#allocation3] sm:$0xe] }
 0x514   :  { %v795_v15 = vld [vmem:[#allocation3 + $0xc] sm:$0xe]  ;;  %v788_v13 = vld [vmem:[#allocation3] sm:$0xf] }
 0x515   :  { %v2113_v16 = vld [vmem:[#allocation3 + $0x8] ss:$0 sps:$4 sm:$0x33]   ;;  %v2116_v6 = vld [vmem:[#allocation3 + $0x14] ss:$0 sps:$4 sm:$0x33]  }
 0x516   :  { %v789_v17 = vld [vmem:[#allocation3 + $0x4] sm:$0xf]  ;;  %v792_v18 = vld [vmem:[#allocation3 + $0x10] sm:$0xf]  ;;  %v855_v20 = vrot.slane %v2113_v16, 1  ;;  %v858_v28 = vrot.slane %v2116_v6, 1 }
 0x517   :  { %v1637_v19 = vcombine.low %v794_v14, %v789_v17  ;;  %v1638_v21 = vcombine.low %v795_v15, %v792_v18  ;;  %v2118_v22 = vld [vmem:[#allocation3 + $0x8] ss:$0 sps:$4 sm:$0x11]   ;;  %v1633_v30 = vcombine.low %v788_v13, %v789_v17  ;;  %v791_v35 = vld [vmem:[#allocation3 + $0xc] sm:$0xf] }
 0x518   :  { %v888_v24 = vshll.u32 %v855_v20, 16  ;;  %v920_v34 = vshll.u32 %v858_v28, 16  ;;  %v828_v31 = vshll.u32 %v2118_v22, 16  ;;  %v832_v39 = vshrl.u32 %v2118_v22, 16 }
 0x519   :  { %v854_v23 = vrot.slane %v1637_v19, 1  ;;  %v857_v25 = vrot.slane %v1638_v21, 1  ;;  %v823_v29 = vshll.u32 %v1637_v19, 16  ;;  %v2120_v26 = vld [vmem:[#allocation3 + $0x14] ss:$0 sps:$4 sm:$0x11]   ;;  %v1635_v44 = vcombine.low %v791_v35, %v792_v18 }
 0x51a   :  { %v890_v32 = vrot.slane %v888_v24, 1  ;;  %v821_v46 = vshrl.u32 %v1637_v19, 16  ;;  %v863_v54 = vshll.u32 %v1633_v30, 16  ;;  %v922_v55 = vrot.slane %v920_v34, 1 }
 0x51b   :  { %v856_v27 = vsel %vm163_vm6, %v854_v23, %v855_v20  ;;  %v859_v33 = vsel %vm163_vm6, %v857_v25, %v858_v28  ;;  %v825_v48 = vrot.slane %v823_v29, 1  ;;  %v830_v58 = vrot.slane %v828_v31, 1 }
 0x51c   :  { %v883_v37 = vshll.u32 %v856_v27, 16  ;;  %v915_v38 = vshll.u32 %v859_v33, 16  ;;  %v881_v45 = vshrl.u32 %v856_v27, 16  ;;  %v913_v51 = vshrl.u32 %v859_v33, 16 }
 0x51d   :  { %v826_v57 = vor.u32 %v825_v48, %v821_v46  ;;  %v837_v60 = vshll.u32 %v1638_v21, 16  ;;  %v876_v1 = vshll.u32 %v832_v39, 16  ;;  %v842_v7 = vshll.u32 %v2120_v26, 16 }
 0x51e   :  { %v885_v49 = vrot.slane %v883_v37, 1  ;;  %v917_v52 = vrot.slane %v915_v38, 1  ;;  %v865_v8 = vrot.slane %v863_v54, 1  ;;  %v835_v41 = vshrl.u32 %v1638_v21, 16 }
 0x51f   :  { %v831_v40 = vsel %vm120_vm7, %v826_v57, %v830_v58  ;;  %v839_v9 = vrot.slane %v837_v60, 1  ;;  %v846_v11 = vshrl.u32 %v2120_v26, 16  ;;  %v861_v12 = vshrl.u32 %v1633_v30, 16 }
 0x520   :  { %v886_v61 = vor.u32 %v885_v49, %v881_v45  ;;  %v918_v0 = vor.u32 %v917_v52, %v913_v51  ;;  %v871_v43 = vshll.u32 %v831_v40, 16  ;;  %v844_v15 = vrot.slane %v842_v7, 1  ;;  %v1641_v45 = vld [vmem:[%s2621_s6] ss:$0 sm:$0xff] }
 0x521   :  { %v840_v14 = vor.u32 %v839_v9, %v835_v41  ;;  %v869_v16 = vshrl.u32 %v831_v40, 16  ;;  %v866_v18 = vor.u32 %v865_v8, %v861_v12  ;;  %v895_v20 = vshll.u32 %v1635_v44, 16 }
 0x522   :  { %v891_v42 = vsel %vm120_vm7, %v886_v61, %v890_v32  ;;  %v923_v10 = vsel %vm120_vm7, %v918_v0, %v922_v55  ;;  %v873_v17 = vrot.slane %v871_v43, 1  ;;  %v878_v6 = vrot.slane %v876_v1, 1 }
 0x523   :  { %1887 = vmatprep.mubr.bf16.mxu1 %v891_v42  ;;  %v845_v19 = vsel %vm120_vm7, %v840_v14, %v844_v15  ;;  %v908_v23 = vshll.u32 %v846_v11, 16  ;;  %v867_v13 = vsel %vm120_vm7, %v866_v18, %v830_v58  ;;  %v897_v29 = vrot.slane %v895_v20, 1 }
 0x524   :  { %1888 = vmatmul.mubr.bf16.vlgmr.msra.gmra.mrb[4].mxu1 %v923_v10  ;;  %v874_v21 = vor.u32 %v873_v17, %v869_v16  ;;  %v903_v22 = vshll.u32 %v845_v19, 16  ;;  %v901_v25 = vshrl.u32 %v845_v19, 16  ;;  %v893_v33 = vshrl.u32 %v1635_v44, 16 }
 0x525   :  { %1927 = vmatpush3.msra.mxu1 %v2399_v5  ;;  %1928 = vmatprep.mubr.msk.f32.mxu1 %vm2129_vm9, %v2130_v4  ;;  %v910_v27 = vrot.slane %v908_v23, 1 }
 0x526   :  { %2043 = vmatprep.subr.bf16.mxu1 %v2128_v63  ;;  %v879_v24 = vsel %vm120_vm7, %v874_v21, %v878_v6  ;;  %v905_v28 = vrot.slane %v903_v22, 1  ;;  %v898_v31 = vor.u32 %v897_v29, %v893_v33 }
 0x527   :  { %1161 = vmatprep.mubr.bf16.mxu0 %v879_v24 }
 0x528   :  { %1162 = vmatmul.mubr.bf16.vlgmr.msra.gmra.mrb[12].mxu0 %v867_v13  ;;  %v906_v30 = vor.u32 %v905_v28, %v901_v25  ;;  %v899_v35 = vsel %vm120_vm7, %v898_v31, %v844_v15 }
 0x529   :  { %2021 = vmatpush3.bf16.msra.mxu0 %v2290_v3 }
 0x52a   :  { %v911_v34 = vsel %vm120_vm7, %v906_v30, %v910_v27  ;;  %2022 = vmatprep.subr.bf16.mxu0 %v2128_v63 }
 0x52b   :  { %1169 = vmatprep.mubr.bf16.mxu0 %v911_v34 }
 0x52d   :  { %2024 = vmatpush3.bf16.msra.mxu0 %v2327_v47 }
 0x52e   :  { %2025 = vmatprep.subr.bf16.mxu0 %v2128_v63 }
 0x530   :  { %1170 = vmatmul.mubr.bf16.gmra.mrb[16].mxu0 %v899_v35  ;;  %v1564_v35 = vld [vmem:[%s2622_s7] sm:$0x1] }
 0x531   :  { %2027 = vmatpush3.bf16.msra.mxu0 %v2337_v50  ;;  %1923 = vmatprep.mubr.msk.f32.mxu0 %vm2129_vm9, %v2130_v4 }
 0x532   :  { %2028 = vmatprep.subr.bf16.mxu0 %v2128_v63 }
 0x535   :  { %2030 = vmatpush3.bf16.msra.mxu0 %v2347_v53 }
 0x536   :  { %2031 = vmatprep.subr.bf16.mxu0 %v2128_v63 }
 0x539   :  { %2033 = vmatpush3.bf16.msra.mxu0 %v2357_v56 }
 0x53a   :  { %2034 = vmatprep.subr.bf16.mxu0 %v2128_v63 }
 0x53d   :  { %2036 = vmatpush3.bf16.msra.mxu0 %v2367_v59 }
 0x53e   :  { %2037 = vmatprep.subr.bf16.mxu0 %v2128_v63 }
 0x541   :  { %2039 = vmatpush3.bf16.msra.mxu0 %v2377_v62 }
 0x542   :  { %2040 = vmatprep.subr.bf16.mxu0 %v2128_v63 }
 0x545   :  { %2042 = vmatpush3.bf16.msra.mxu0 %v2386_v2 }
 0x546   :  { %1966 = vmatprep.subr.mxu0 %v2130_v4 }
 0x5f7   :  { %v1889_v37 = vpop.f32.mrb[4].mxu1 }
 0x5f8   :  { %v1212_v38 = vpop.f32.mrb[5].mxu1 }
 0x5f9   :  { %v1890_v39 = vpop.f32.mrb[6].mxu1 }
 0x5fa   :  { %v1215_v26 = vpop.f32.mrb[7].mxu1 }
 0x5fb   :  { %v1731_v44 = vpop.f32.mrb[12].mxu0 }
 0x5fc   :  { %v1732_v32 = vpop.f32.mrb[13].mxu0 }
 0x5fd   :  { %v1733_v46 = vadd.f32 %v1732_v32, %v1731_v44  ;;  %v1734_v48 = vpop.f32.mrb[14].mxu0  ;;  %v1668_v44 = vld [vmem:[%s2623_s8] ss:$0 sm:$0xff] }
 0x5fe   :  { %v1735_v49 = vpop.f32.mrb[15].mxu0 }
 0x5ff   :  { %v1164_v51 = vadd.f32 %v1733_v46, %v1641_v45  ;;  %v1736_v52 = vadd.f32 %v1735_v49, %v1734_v48 }
 0x601   :  { %v1213_v54 = vadd.f32 %v1212_v38, %v1164_v51  ;;  %v1167_v55 = vadd.f32 %v1736_v52, %v1641_v45 }
 0x603   :  { %v1216_v57 = vadd.f32 %v1215_v26, %v1167_v55  ;;  %v1737_v58 = vpop.f32.mrb[16].mxu0 }
 0x604   :  { %v1738_v60 = vpop.f32.mrb[17].mxu0 }
 0x605   :  { %v1739_v61 = vadd.f32 %v1738_v60, %v1737_v58  ;;  %v1740_v0 = vpop.f32.mrb[18].mxu0  ;;  %v1227_v8 = vadd.f32 %v1216_v57, %v1213_v54 }
 0x606   :  { %v1741_v1 = vpop.f32.mrb[19].mxu0 }
 0x607   :  { %v1172_v7 = vadd.f32 %v1739_v61, %v1641_v45  ;;  %v1742_v40 = vadd.f32 %v1741_v1, %v1740_v0 }
 0x609   :  { %v1221_v41 = vadd.f32 %v1889_v37, %v1172_v7  ;;  %v1175_v9 = vadd.f32 %v1742_v40, %v1641_v45 }
 0x60b   :  { %v1228_v42 = vadd.f32 %v1227_v8, %v1221_v41  ;;  %v1224_v10 = vadd.f32 %v1890_v39, %v1175_v9 }
 0x60d   :  { %v1229_v43 = vadd.f32 %v1228_v42, %v1224_v10 }
 0x60f   :  { %v1230_v11 = vrot.slane %v1229_v43, 4 }
 0x611   :  { %v1231_v12 = vadd.f32 %v1230_v11, %v1229_v43 }
 0x613   :  { %v1232_v14 = vrot.slane %v1231_v12, 2 }
 0x615   :  { %v1233_v15 = vadd.f32 %v1232_v14, %v1231_v12 }
 0x617   :  { %v1234_v16 = vrot.slane %v1233_v15, 1 }
 0x619   :  { %v1235_v17 = vadd.f32 %v1234_v16, %v1233_v15 }
 0x61b   :  { %1924 = vmatmul.mubr.f32.vlgmr.msra.gmra.mrb[20].mxu0 %v1235_v17 }
 0x61c   :  { %1967 = vmatpush3.msra.mxu0 %v2399_v5  ;;  %1968 = vmatprep.mubr.msk.f32.mxu0 %vm2129_vm9, %v2130_v4 }
 0x6ee   :  { %v1318_v18 = vpop.f32.mrb[20].mxu0 }
 0x6ef   :  { %v1322_v19 = vmul.f32 0.001953125, %v1318_v18  ;;  %v1925_v20 = vpop.f32.mrb[21].mxu0 }
 0x6f1   :  { %1929 = vmatmul.mubr.msk.f32.vlgmr.msra.gmra.mrb[8].mxu1 %vm482_vm10, %v1322_v19 }
 0x6f2   :  { %2045 = vmatpush3.bf16.msra.mxu1 %v2290_v3  ;;  %1963 = vmatprep.mubr.msk.f32.mxu1 %vm2129_vm9, %v2130_v4 }
 0x6f3   :  { %2046 = vmatprep.subr.bf16.mxu1 %v2128_v63 }
 0x6f6   :  { %2048 = vmatpush3.bf16.msra.mxu1 %v2327_v47 }
 0x6f7   :  { %2049 = vmatprep.subr.bf16.mxu1 %v2128_v63 }
 0x6fa   :  { %2051 = vmatpush3.bf16.msra.mxu1 %v2337_v50 }
 0x6fb   :  { %2052 = vmatprep.subr.bf16.mxu1 %v2128_v63 }
 0x6fe   :  { %2054 = vmatpush3.bf16.msra.mxu1 %v2347_v53 }
 0x6ff   :  { %2055 = vmatprep.subr.bf16.mxu1 %v2128_v63 }
 0x702   :  { %2057 = vmatpush3.bf16.msra.mxu1 %v2357_v56 }
 0x703   :  { %2058 = vmatprep.subr.bf16.mxu1 %v2128_v63 }
 0x706   :  { %2060 = vmatpush3.bf16.msra.mxu1 %v2367_v59 }
 0x707   :  { %2061 = vmatprep.subr.bf16.mxu1 %v2128_v63 }
 0x70a   :  { %2063 = vmatpush3.bf16.msra.mxu1 %v2377_v62 }
 0x70b   :  { %2064 = vmatprep.subr.bf16.mxu1 %v2128_v63 }
 0x70e   :  { %2066 = vmatpush3.bf16.msra.mxu1 %v2386_v2 }
 0x7c4   :  { %v1393_v3 = vpop.f32.mrb[8].mxu1 }
 0x7c5   :  { %v1400_v47 = vrot.slane %v1393_v3, %v2427_v36  ;;  %v1930_v50 = vpop.f32.mrb[9].mxu1 }
 0x7c7   :  { %v1401_v53 = vsub.f32 %v1213_v54, %v1400_v47  ;;  %v1402_v4 = vsub.f32 %v1216_v57, %v1400_v47  ;;  %v1403_v5 = vsub.f32 %v1221_v41, %v1400_v47  ;;  %v1404_v56 = vsub.f32 %v1224_v10, %v1400_v47 }
 0x7c9   :  { %v1405_v21 = vmul.f32 %v1401_v53, %v1401_v53  ;;  %v1406_v6 = vmul.f32 %v1402_v4, %v1402_v4  ;;  %v1407_v22 = vmul.f32 %v1403_v5, %v1403_v5  ;;  %v1408_v23 = vmul.f32 %v1404_v56, %v1404_v56 }
 0x7cb   :  { %v1409_v59 = vadd.f32 %v1406_v6, %v1405_v21 }
 0x7cd   :  { %v1410_v24 = vadd.f32 %v1409_v59, %v1407_v22 }
 0x7cf   :  { %v1411_v25 = vadd.f32 %v1410_v24, %v1408_v23 }
 0x7d1   :  { %v1412_v62 = vrot.slane %v1411_v25, 4 }
 0x7d3   :  { %v1413_v28 = vadd.f32 %v1412_v62, %v1411_v25 }
 0x7d5   :  { %v1414_v63 = vrot.slane %v1413_v28, 2 }
 0x7d7   :  { %v1415_v13 = vadd.f32 %v1414_v63, %v1413_v28 }
 0x7d9   :  { %v1416_v2 = vrot.slane %v1415_v13, 1 }
 0x7db   :  { %v1417_v29 = vadd.f32 %v1416_v2, %v1415_v13 }
 0x7dd   :  { %1964 = vmatmul.mubr.f32.vlgmr.msra.gmra.mrb[10].mxu1 %v1417_v29 }
 0x8b0   :  { %v1484_v30 = vpop.f32.mrb[10].mxu1 }
 0x8b1   :  { %v1488_v27 = vmul.f32 0.001953125, %v1484_v30  ;;  %v1965_v33 = vpop.f32.mrb[11].mxu1 }
 0x8b3   :  { %v1489_v34 = vadd.f32 1e-05, %v1488_v27 }
 0x8b5   :  { %2124 = vrsqrt.f32 %v1489_v34 }
 0x8bf   :  { %v2125_v31 = vpop.eup %2124 }
 0x8c0   :  { %1969 = vmatmul.mubr.msk.f32.vlgmr.msra.gmra.mrb[22].mxu0 %vm482_vm10, %v2125_v31 }
 0x993   :  { %v1560_v37 = vpop.f32.mrb[22].mxu0 }
 0x994   :  { %v1565_v38 = vmul.f32 %v1564_v35, %v1560_v37  ;;  %v1970_v39 = vpop.f32.mrb[23].mxu0 }
 0x996   :  { %v1570_v26 = vrot.slane %v1565_v38, %v2427_v36 }
 0x998   :  { %v1572_v45 = vmul.f32 %v1570_v26, %v1401_v53  ;;  %v1573_v32 = vmul.f32 %v1570_v26, %v1402_v4  ;;  %v1574_v46 = vmul.f32 %v1570_v26, %v1403_v5  ;;  %v1575_v48 = vmul.f32 %v1570_v26, %v1404_v56 }
 0x99a   :  { %v1583_v49 = vadd.f32 %v1668_v44, %v1572_v45  ;;  %v1584_v51 = vadd.f32 %v1668_v44, %v1573_v32  ;;  %v1585_v52 = vadd.f32 %v1668_v44, %v1574_v46  ;;  %v1586_v54 = vadd.f32 %v1668_v44, %v1575_v48 }
 0x99c   :  { %v1587_v55 = vmax.f32 %v1583_v49, 0.0  ;;  %v1588_v57 = vmax.f32 %v1584_v51, 0.0  ;;  %v1589_v58 = vmax.f32 %v1585_v52, 0.0  ;;  %v1590_v60 = vmax.f32 %v1586_v54, 0.0 }
 0x99e   :  { %1591 = vst [vmem:[%s2624_s11] sm:$0xff] %v1587_v55  ;;  %1592 = vst [vmem:[%s2624_s11 + $0x8] sm:$0xff] %v1588_v57 }
 0x99f   :  { %1593 = vst [vmem:[%s2624_s11 + $0x10] sm:$0xff] %v1589_v58  ;;  %1594 = vst [vmem:[%s2624_s11 + $0x18] sm:$0xff] %v1590_v60 }

</bundles_post_ra>
